<compile_context>
chip_gen: v7x
topology: tpu7x:2x2x1
jax: 0.10.0
libtpu: 0.0.40
codegen_flags: <defaults>
</compile_context>

<pallas_src>
import functools

import jax
import jax.numpy as jnp
from jax.experimental import pallas as pl
from jax.experimental.pallas import tpu as pltpu

LATENT = 13
HID = 32
D_IN = LATENT + 3          # 16  ([latent | xyz])
H1_OUT = HID - D_IN        # 16  (layer-1 output shrunk because layer 2 is latent_in)

MAX_TILE = 16384                       # points per grid step (review: >> 4096)
MIN_TILE = 256                         # lane-dense lower bound for multi-core split
VMEM_LIMIT_BYTES = 48 * 1024 * 1024    # 2 x 8 MiB x-block buffers + scratch fit on all gens


def decoder_kernel(x_ref,
                   wx_ref, bx_ref,
                   w1_ref, b1_ref,
                   w2a_ref,
                   w3_ref, b3_ref,
                   o_ref):
    """Full DeepSDF decoder MLP for one batch tile; feature-major intermediates."""
    x = x_ref[...]                                            # (TN, 16) f32, straight from HBM

    # Stacked x-side matmul (layer 0 + the x-half of layer 2): contract the
    # feature dim of both operands -> (64, TN) with the batch on the 128-lane
    # axis.  rows 0..31 = W0 @ x.T + b0, rows 32..63 = W2b @ x.T + b2.
    z = jax.lax.dot_general(
        wx_ref[...], x,
        dimension_numbers=(((1,), (1,)), ((), ())),
        preferred_element_type=jnp.float32) + bx_ref[...]     # (64, TN) f32

    h = jnp.maximum(z[:HID], 0.0)                             # layer 0 + ReLU   (32, TN)
    xz = z[HID:]                                              # W2b @ x.T + b2   (32, TN)

    # layer 1: Linear(32->16) + ReLU   (bf16 operands, f32 accumulation)
    h = jnp.dot(w1_ref[...], h.astype(jnp.bfloat16),
                preferred_element_type=jnp.float32) + b1_ref[...]
    h = jnp.maximum(h, 0.0)                                   # (16, TN)

    # layer 2 (latent_in): cat([h, input]) -> Linear(32->32) + ReLU, realised as
    # W2a @ h + (W2b @ x + b2) -- no in-kernel concat.
    h = jnp.dot(w2a_ref[...], h.astype(jnp.bfloat16),
                preferred_element_type=jnp.float32) + xz
    h = jnp.maximum(h, 0.0)                                   # (32, TN)

    # layer 3: Linear(32->1), then final tanh (self.th)
    y = jnp.dot(w3_ref[...], h.astype(jnp.bfloat16),
                preferred_element_type=jnp.float32) + b3_ref[...]
    o_ref[...] = jnp.tanh(y)                                  # (1, TN), lane-dense store


def init_params(key):
    """Deterministic nn.Linear-style init: U(-1/sqrt(fan_in), 1/sqrt(fan_in)).

    Weights are stored PyTorch-style as (out_features, in_features)."""
    in_dims = (D_IN, HID, HID, HID)
    out_dims = (HID, H1_OUT, HID, 1)
    params = []
    for din, dout in zip(in_dims, out_dims):
        key, kw, kb = jax.random.split(key, 3)
        bound = 1.0 / float(din) ** 0.5
        w = jax.random.uniform(kw, (dout, din), jnp.float32, -bound, bound)
        b = jax.random.uniform(kb, (dout,), jnp.float32, -bound, bound)
        params.append((w, b))
    return params


def _num_tensorcores_per_chip():
    # Only v7x has 2 TensorCores per chip; v5e/v6e have 1.  Best-effort probe.
    try:
        kind = jax.devices()[0].device_kind.lower()
    except Exception:
        return 1
    return 2 if "v7" in kind else 1


def _choose_tile(n):
    """Batch-tile (points per grid step).  tile_n is a pure function of n, so it
    adds no recompiles beyond the shape-driven ones."""
    n_tc = _num_tensorcores_per_chip()
    if n_tc <= 1 or n <= MIN_TILE:
        # Single-TC chips (v5e/v6e): one maximal tile -- no extra grid-step
        # overhead, no padded remainder (block == full array when n <= MAX_TILE).
        return min(n, MAX_TILE)
    # v7x: aim for >= n_tc balanced "parallel" steps so both TensorCores work.
    per_core = -(-n // n_tc)
    tile = -(-per_core // MIN_TILE) * MIN_TILE
    return min(tile, MAX_TILE)


@functools.partial(jax.jit, static_argnames=("tile_n",))
def _decoder_forward_impl(x, params, tile_n):
    n, d_in = x.shape
    assert d_in == D_IN
    (w0, b0), (w1, b1), (w2, b2), (w3, b3) = params

    # Stacked x-side weight/bias (layer 0 rows, then the x-half of layer 2).
    wx = jnp.concatenate([w0, w2[:, H1_OUT:]], axis=0).astype(jnp.float32)      # (64, 16)
    bx = jnp.concatenate([b0, b2], axis=0).reshape(-1, 1).astype(jnp.float32)   # (64, 1)
    w1b = w1.astype(jnp.bfloat16)                                               # (16, 32)
    b1c = b1.reshape(-1, 1).astype(jnp.float32)                                 # (16, 1)
    w2a = w2[:, :H1_OUT].astype(jnp.bfloat16)                                   # (32, 16)
    w3b = w3.astype(jnp.bfloat16)                                               # (1, 32)
    b3c = b3.reshape(-1, 1).astype(jnp.float32)                                 # (1, 1)

    grid = (pl.cdiv(n, tile_n),)          # partial final block handled by Pallas masking
    resident = lambda a: pl.BlockSpec(a.shape, lambda i: (0, 0))   # weights stay in VMEM

    out = pl.pallas_call(
        decoder_kernel,
        out_shape=jax.ShapeDtypeStruct((1, n), jnp.float32),
        grid_spec=pl.GridSpec(
            grid=grid,
            in_specs=[pl.BlockSpec((tile_n, D_IN), lambda i: (i, 0)),   # streamed x tile
                      resident(wx), resident(bx),
                      resident(w1b), resident(b1c),
                      resident(w2a),
                      resident(w3b), resident(b3c)],
            out_specs=pl.BlockSpec((1, tile_n), lambda i: (0, i)),      # lane-dense output
        ),
        compiler_params=pltpu.CompilerParams(
            dimension_semantics=("parallel",),
            vmem_limit_bytes=VMEM_LIMIT_BYTES),
    )(x, wx, bx, w1b, b1c, w2a, w3b, b3c)

    return out.reshape(n, 1)              # (1, n) -> (n, 1): contiguous, free


def decoder_forward(x, params):
    """DeepSDF decoder forward; any batch size (remainder tile is masked)."""
    tile_n = _choose_tile(x.shape[0])
    return _decoder_forward_impl(x, params, tile_n=tile_n)


def decoder_reference(x, params):
    """Pure-f32 JAX reference reproducing the PyTorch forward (eval mode)."""
    (w0, b0), (w1, b1), (w2, b2), (w3, b3) = params
    h = jnp.maximum(jnp.dot(x, w0.T) + b0, 0.0)               # layer 0 + relu
    h = jnp.maximum(jnp.dot(h, w1.T) + b1, 0.0)               # layer 1 + relu
    h = jnp.concatenate([h, x], axis=1)                       # latent_in at layer 2
    h = jnp.maximum(jnp.dot(h, w2.T) + b2, 0.0)               # layer 2 + relu
    y = jnp.dot(h, w3.T) + b3                                 # layer 3
    return jnp.tanh(y)                                        # final self.th


def decoder_reference_mixed(x, params):
    """Reference with the kernel's exact precision choices (x-side f32, h-side bf16)."""
    (w0, b0), (w1, b1), (w2, b2), (w3, b3) = params
    bf = lambda a: a.astype(jnp.bfloat16)
    dot = lambda a, b: jnp.dot(a, b, preferred_element_type=jnp.float32)
    h0 = jnp.maximum(dot(x, w0.T) + b0, 0.0)                              # f32 x-side
    xz = dot(x, w2[:, H1_OUT:].T) + b2                                    # f32 x-side
    h1 = jnp.maximum(dot(bf(h0), bf(w1).T) + b1, 0.0)                     # bf16 h-side
    h2 = jnp.maximum(dot(bf(h1), bf(w2[:, :H1_OUT]).T) + xz, 0.0)         # bf16 h-side
    y = dot(bf(h2), bf(w3).T) + b3
    return jnp.tanh(y)


if __name__ == "__main__":
    key = jax.random.PRNGKey(0)
    key, kx = jax.random.split(key)

    N = 300                                       # deliberately not a multiple of 128
    x = jax.random.normal(kx, (N, D_IN), jnp.float32)   # [latent(13) | xyz(3)]
    params = init_params(key)

    out = jax.block_until_ready(decoder_forward(x, params))
    assert out.shape == (N, 1)

    ref_mixed = decoder_reference_mixed(x, params)   # kernel-matching precision
    ref_f32 = decoder_reference(x, params)           # full-f32 PyTorch-equivalent
    assert float(jnp.max(jnp.abs(out - ref_mixed))) < 5e-3
    assert float(jnp.max(jnp.abs(out - ref_f32))) < 5e-2

    # Also exercise the multi-step grid + masked partial-final-block path.
    out_tiled = jax.block_until_ready(_decoder_forward_impl(x, params, tile_n=128))
    assert out_tiled.shape == (N, 1)
    assert float(jnp.max(jnp.abs(out_tiled - ref_mixed))) < 5e-3

    print("KERNEL_OK")
</pallas_src>

<mosaic_0001>
module attributes {stable_mosaic.version = 11 : i64} {
  func.func @decoder_kernel(%arg0: i32, %arg1: memref<300x16xf32, #tpu.memory_space<vmem>>, %arg2: memref<64x16xf32, #tpu.memory_space<vmem>>, %arg3: memref<64x1xf32, #tpu.memory_space<vmem>>, %arg4: memref<16x32xbf16, #tpu.memory_space<vmem>>, %arg5: memref<16x1xf32, #tpu.memory_space<vmem>>, %arg6: memref<32x16xbf16, #tpu.memory_space<vmem>>, %arg7: memref<1x32xbf16, #tpu.memory_space<vmem>>, %arg8: memref<1x1xf32, #tpu.memory_space<vmem>>, %arg9: memref<1x300xf32, #tpu.memory_space<vmem>>) attributes {dimension_semantics = [#tpu.dimension_semantics<parallel>], iteration_bounds = array<i64: 1>, scalar_prefetch = 0 : i64, scratch_operands = 0 : i64, tpu.core_type = #tpu.core_type<tc>, window_params = [{transform_indices = @transform_0, window_bounds = array<i64: 300, 16>}, {pipeline_mode = #tpu.pipeline_mode<synchronous>, transform_indices = @transform_1, window_bounds = array<i64: 64, 16>}, {pipeline_mode = #tpu.pipeline_mode<synchronous>, transform_indices = @transform_2, window_bounds = array<i64: 64, 1>}, {pipeline_mode = #tpu.pipeline_mode<synchronous>, transform_indices = @transform_3, window_bounds = array<i64: 16, 32>}, {pipeline_mode = #tpu.pipeline_mode<synchronous>, transform_indices = @transform_4, window_bounds = array<i64: 16, 1>}, {pipeline_mode = #tpu.pipeline_mode<synchronous>, transform_indices = @transform_5, window_bounds = array<i64: 32, 16>}, {pipeline_mode = #tpu.pipeline_mode<synchronous>, transform_indices = @transform_6, window_bounds = array<i64: 1, 32>}, {pipeline_mode = #tpu.pipeline_mode<synchronous>, transform_indices = @transform_7, window_bounds = array<i64: 1, 1>}, {transform_indices = @transform_8, window_bounds = array<i64: 1, 300>}]} {
    %c0 = arith.constant 0 : index
    %c0_0 = arith.constant 0 : index
    %0 = vector.load %arg1[%c0, %c0_0] : memref<300x16xf32, #tpu.memory_space<vmem>>, vector<300x16xf32>
    %c0_1 = arith.constant 0 : index
    %c0_2 = arith.constant 0 : index
    %1 = vector.load %arg2[%c0_1, %c0_2] : memref<64x16xf32, #tpu.memory_space<vmem>>, vector<64x16xf32>
    %cst = arith.constant dense<0.000000e+00> : vector<64x300xf32>
    %2 = tpu.matmul %1, %0, %cst {dimension_numbers = #tpu.dot_dimension_numbers<[1], [1], [0], [0], [0, 0, 1, 0], [], []>} : vector<64x16xf32>, vector<300x16xf32>, vector<64x300xf32> -> vector<64x300xf32>
    %c0_3 = arith.constant 0 : index
    %c0_4 = arith.constant 0 : index
    %3 = vector.load %arg3[%c0_3, %c0_4] : memref<64x1xf32, #tpu.memory_space<vmem>>, vector<64x1xf32>
    %4 = vector.broadcast %3 : vector<64x1xf32> to vector<64x300xf32>
    %5 = arith.addf %2, %4 : vector<64x300xf32>
    %6 = vector.extract_strided_slice %5 {offsets = [0, 0], sizes = [32, 300], strides = [1, 1]} : vector<64x300xf32> to vector<32x300xf32>
    %cst_5 = arith.constant 0.000000e+00 : f32
    %7 = vector.broadcast %cst_5 : f32 to vector<32x300xf32>
    %8 = arith.maximumf %6, %7 : vector<32x300xf32>
    %9 = vector.extract_strided_slice %5 {offsets = [32, 0], sizes = [32, 300], strides = [1, 1]} : vector<64x300xf32> to vector<32x300xf32>
    %c0_6 = arith.constant 0 : index
    %c0_7 = arith.constant 0 : index
    %10 = vector.load %arg4[%c0_6, %c0_7] : memref<16x32xbf16, #tpu.memory_space<vmem>>, vector<16x32xbf16>
    %11 = arith.truncf %8 : vector<32x300xf32> to vector<32x300xbf16>
    %cst_8 = arith.constant dense<0.000000e+00> : vector<16x300xf32>
    %12 = tpu.matmul %10, %11, %cst_8 {dimension_numbers = #tpu.dot_dimension_numbers<[1], [0], [0], [1], [0, 0, 1, 1], [], []>} : vector<16x32xbf16>, vector<32x300xbf16>, vector<16x300xf32> -> vector<16x300xf32>
    %c0_9 = arith.constant 0 : index
    %c0_10 = arith.constant 0 : index
    %13 = vector.load %arg5[%c0_9, %c0_10] : memref<16x1xf32, #tpu.memory_space<vmem>>, vector<16x1xf32>
    %14 = vector.broadcast %13 : vector<16x1xf32> to vector<16x300xf32>
    %15 = arith.addf %12, %14 : vector<16x300xf32>
    %cst_11 = arith.constant 0.000000e+00 : f32
    %16 = vector.broadcast %cst_11 : f32 to vector<16x300xf32>
    %17 = arith.maximumf %15, %16 : vector<16x300xf32>
    %c0_12 = arith.constant 0 : index
    %c0_13 = arith.constant 0 : index
    %18 = vector.load %arg6[%c0_12, %c0_13] : memref<32x16xbf16, #tpu.memory_space<vmem>>, vector<32x16xbf16>
    %19 = arith.truncf %17 : vector<16x300xf32> to vector<16x300xbf16>
    %cst_14 = arith.constant dense<0.000000e+00> : vector<32x300xf32>
    %20 = tpu.matmul %18, %19, %cst_14 {dimension_numbers = #tpu.dot_dimension_numbers<[1], [0], [0], [1], [0, 0, 1, 1], [], []>} : vector<32x16xbf16>, vector<16x300xbf16>, vector<32x300xf32> -> vector<32x300xf32>
    %21 = arith.addf %20, %9 : vector<32x300xf32>
    %cst_15 = arith.constant 0.000000e+00 : f32
    %22 = vector.broadcast %cst_15 : f32 to vector<32x300xf32>
    %23 = arith.maximumf %21, %22 : vector<32x300xf32>
    %c0_16 = arith.constant 0 : index
    %c0_17 = arith.constant 0 : index
    %24 = vector.load %arg7[%c0_16, %c0_17] : memref<1x32xbf16, #tpu.memory_space<vmem>>, vector<1x32xbf16>
    %25 = arith.truncf %23 : vector<32x300xf32> to vector<32x300xbf16>
    %cst_18 = arith.constant dense<0.000000e+00> : vector<1x300xf32>
    %26 = tpu.matmul %24, %25, %cst_18 {dimension_numbers = #tpu.dot_dimension_numbers<[1], [0], [0], [1], [0, 0, 1, 1], [], []>} : vector<1x32xbf16>, vector<32x300xbf16>, vector<1x300xf32> -> vector<1x300xf32>
    %c0_19 = arith.constant 0 : index
    %c0_20 = arith.constant 0 : index
    %27 = vector.load %arg8[%c0_19, %c0_20] : memref<1x1xf32, #tpu.memory_space<vmem>>, vector<1x1xf32>
    %28 = vector.broadcast %27 : vector<1x1xf32> to vector<1x300xf32>
    %29 = arith.addf %26, %28 : vector<1x300xf32>
    %30 = math.tanh %29 : vector<1x300xf32>
    %c0_21 = arith.constant 0 : index
    %c0_22 = arith.constant 0 : index
    %31 = vector.load %arg9[%c0_21, %c0_22] : memref<1x300xf32, #tpu.memory_space<vmem>>, vector<1x300xf32>
    tpu.vector_store %arg9[%c0_21, %c0_22], %30 {strides = array<i32>} : memref<1x300xf32, #tpu.memory_space<vmem>>, vector<1x300xf32>,
    return
  }
  func.func @transform_0(%arg0: i32) -> (i32, i32) {
    %c0_i32 = arith.constant 0 : i32
    %c0_i32_0 = arith.constant 0 : i32
    return %arg0, %c0_i32 : i32, i32
  }
  func.func @transform_1(%arg0: i32) -> (i32, i32) {
    %c0_i32 = arith.constant 0 : i32
    %c0_i32_0 = arith.constant 0 : i32
    %c0_i32_1 = arith.constant 0 : i32
    return %c0_i32, %c0_i32_0 : i32, i32
  }
  func.func @transform_2(%arg0: i32) -> (i32, i32) {
    %c0_i32 = arith.constant 0 : i32
    %c0_i32_0 = arith.constant 0 : i32
    %c0_i32_1 = arith.constant 0 : i32
    return %c0_i32, %c0_i32_0 : i32, i32
  }
  func.func @transform_3(%arg0: i32) -> (i32, i32) {
    %c0_i32 = arith.constant 0 : i32
    %c0_i32_0 = arith.constant 0 : i32
    %c0_i32_1 = arith.constant 0 : i32
    return %c0_i32, %c0_i32_0 : i32, i32
  }
  func.func @transform_4(%arg0: i32) -> (i32, i32) {
    %c0_i32 = arith.constant 0 : i32
    %c0_i32_0 = arith.constant 0 : i32
    %c0_i32_1 = arith.constant 0 : i32
    return %c0_i32, %c0_i32_0 : i32, i32
  }
  func.func @transform_5(%arg0: i32) -> (i32, i32) {
    %c0_i32 = arith.constant 0 : i32
    %c0_i32_0 = arith.constant 0 : i32
    %c0_i32_1 = arith.constant 0 : i32
    return %c0_i32, %c0_i32_0 : i32, i32
  }
  func.func @transform_6(%arg0: i32) -> (i32, i32) {
    %c0_i32 = arith.constant 0 : i32
    %c0_i32_0 = arith.constant 0 : i32
    %c0_i32_1 = arith.constant 0 : i32
    return %c0_i32, %c0_i32_0 : i32, i32
  }
  func.func @transform_7(%arg0: i32) -> (i32, i32) {
    %c0_i32 = arith.constant 0 : i32
    %c0_i32_0 = arith.constant 0 : i32
    %c0_i32_1 = arith.constant 0 : i32
    return %c0_i32, %c0_i32_0 : i32, i32
  }
  func.func @transform_8(%arg0: i32) -> (i32, i32) {
    %c0_i32 = arith.constant 0 : i32
    %c0_i32_0 = arith.constant 0 : i32
    return %c0_i32, %arg0 : i32, i32
  }
}

</mosaic_0001>

<bundles_post_ra>
// kernel: _decoder_forward_impl.1
= control target key start
LH: loop header
LB: loop body
LE: loop exit
PB: predicated region body
PF: predicated region fallthrough
CT: control target
= control target key end

     0   :  { %s1560_s0 = inlined_call_operand.vmem [shape: f32[300,16], index: 0, kind: input, shape index: {}]   ;;  %s1561_s1 = inlined_call_operand.vmem [shape: f32[64,16], index: 1, kind: input, shape index: {}]   ;;  %s1562_s2 = inlined_call_operand.vmem [shape: f32[64,1], index: 2, kind: input, shape index: {}]   ;;  %s1563_s3 = inlined_call_operand.vmem [shape: bf16[16,32], index: 3, kind: input, shape index: {}]   ;;  %s1564_s4 = inlined_call_operand.vmem [shape: f32[16,1], index: 4, kind: input, shape index: {}]   ;;  %s1565_s5 = inlined_call_operand.vmem [shape: bf16[32,16], index: 5, kind: input, shape index: {}]   ;;  %s1566_s6 = inlined_call_operand.vmem [shape: bf16[1,32], index: 6, kind: input, shape index: {}]   ;;  %s1567_s7 = inlined_call_operand.<no memory space> [shape: f32[1,1], index: 7, kind: input, shape index: {}]   ;;  %s1568_s8 = inlined_call_operand.hbm [shape: f32[1,300], index: 8, kind: output, shape index: {}]  }
   0x1   :  { %v13_v0 = vstv %s1567_s7 }
   0x2   :  { %14 = vst [vmem:[#allocation2] sm:$0x1] %v13_v0 }
   0x3   :  { %v49_v1 = vld [vmem:[%s1560_s0 + $0x80] sm:$0xff]  ;;  %v50_v2 = vld [vmem:[%s1560_s0 + $0x88] sm:$0xff]  ;;  %vm127_vm0 = vcmask 130048   ;;  %v51_v7 = vld [vmem:[%s1560_s0 + $0x90] sm:$0xff]  ;;  %v1190_v8 = vmov 0  }
   0x4   :  { %v33_v3 = vld [vmem:[%s1560_s0] sm:$0xff]  ;;  %v1084_v4 = vpack.c.bf16 %v50_v2, %v49_v1  ;;  %vm1254_vm1 = vmpackc.low %vm127_vm0, %vm127_vm0  ;;  %v34_v6 = vld [vmem:[%s1560_s0 + $0x8] sm:$0xff]  ;;  %1155 = vset.pattern.permute.xlu0 %v1190_v8  ;;  %1156 = vset.pattern.permute.xlu1 %v1190_v8 }
   0x5   :  { %v1087_v9 = vpack.c.bf16 %v34_v6, %v33_v3  ;;  %v52_v10 = vld [vmem:[%s1560_s0 + $0x98] sm:$0xff]  ;;  %v35_v12 = vld [vmem:[%s1560_s0 + $0x10] sm:$0xff]  ;;  %v65_v14 = vld [vmem:[%s1560_s0 + $0x100] sm:$0xff] }
   0x6   :  { %1086 = vmatprep.subr.msk.bf16.mxu0 %vm1254_vm1, %v1084_v4  ;;  %v1090_v11 = vpack.c.bf16 %v52_v10, %v51_v7  ;;  %v36_v13 = vld [vmem:[%s1560_s0 + $0x18] sm:$0xff]  ;;  %v53_v15 = vld [vmem:[%s1560_s0 + $0xa0] sm:$0xff]  ;;  %v54_v16 = vld [vmem:[%s1560_s0 + $0xa8] sm:$0xff] }
   0x7   :  { %1089 = vmatpush3.bf16.xpose.msk.msra.mxu0 %vm1254_vm1, %v1087_v9  ;;  %v66_v17 = vld [vmem:[%s1560_s0 + $0x108] sm:$0xff]  ;;  %v67_v19 = vld [vmem:[%s1560_s0 + $0x110] sm:$0xff]  ;;  %v1093_v20 = vpack.c.bf16 %v36_v13, %v35_v12  ;;  %v68_v21 = vld [vmem:[%s1560_s0 + $0x118] sm:$0xff]  ;;  %v1096_v22 = vpack.c.bf16 %v54_v16, %v53_v15 }
   0x8   :  { %1092 = vmatprep.subr.msk.bf16.mxu0 %vm1254_vm1, %v1090_v11  ;;  %v1132_v18 = vpack.c.bf16 %v66_v17, %v65_v14  ;;  %v1138_v23 = vpack.c.bf16 %v68_v21, %v67_v19  ;;  %v1308_v24 = vld [vmem:[%s1561_s1] sm:$0xff]  ;;  %v70_v26 = vld [vmem:[%s1560_s0 + $0x128] sm:$0xf]  ;;  %v55_v29 = vld [vmem:[%s1560_s0 + $0xb0] sm:$0xff] }
   0x9   :  { %v69_v25 = vld [vmem:[%s1560_s0 + $0x120] sm:$0xff]  ;;  %1050 = vmatprep.mubr.msk.f32.mxu1 %vm127_vm0, %v1308_v24  ;;  %v38_v28 = vld [vmem:[%s1560_s0 + $0x28] sm:$0xff]  ;;  %999 = vmatprep.mubr.msk.f32.mxu0 %vm127_vm0, %v1308_v24  ;;  %v56_v30 = vld [vmem:[%s1560_s0 + $0xb8] sm:$0xff] }
   0xa   :  { %1134 = vmatprep.subr.msk.bf16.mxu1 %vm1254_vm1, %v1132_v18  ;;  %v37_v27 = vld [vmem:[%s1560_s0 + $0x20] sm:$0xff]  ;;  %v1144_v31 = vpack.c.bf16 %v70_v26, %v69_v25  ;;  %v81_v34 = vld [vmem:[%s1562_s2 + $0x10] sm:$0xff]  ;;  %v1102_v35 = vpack.c.bf16 %v56_v30, %v55_v29  ;;  %v80_v36 = vld [vmem:[%s1562_s2 + $0x8] sm:$0xff] }
   0xb   :  { %1137 = vmatpush3.bf16.xpose.msk.msra.mxu1 %vm1254_vm1, %v1132_v18  ;;  %v79_v32 = vld [vmem:[%s1562_s2] sm:$0xff]  ;;  %v1099_v33 = vpack.c.bf16 %v38_v28, %v37_v27  ;;  %99 = vperm.xlu1 %1156, %v81_v34   ;;  %v82_v37 = vld [vmem:[%s1562_s2 + $0x18] sm:$0xff]  ;;  %v39_v38 = vld [vmem:[%s1560_s0 + $0x30] sm:$0xff] }
   0xc   :  { %1140 = vmatprep.subr.msk.bf16.mxu1 %vm1254_vm1, %v1138_v23  ;;  %89 = vperm.xlu0 %1155, %v79_v32   ;;  %v40_v39 = vld [vmem:[%s1560_s0 + $0x38] sm:$0xff]  ;;  %v504_v40 = vld [vmem:[%s1564_s4] sm:$0xff] }
   0xf   :  { %1095 = vmatpush3.bf16.xpose.msk.msra.mxu0 %vm1254_vm1, %v1093_v20  ;;  %104 = vperm.xlu1 %1156, %v82_v37  }
  0x10   :  { %1098 = vmatprep.subr.msk.bf16.mxu0 %vm1254_vm1, %v1096_v22  ;;  %94 = vperm.xlu0 %1155, %v80_v36  }
  0x13   :  { %1143 = vmatpush3.bf16.xpose.msk.msra.mxu1 %vm1254_vm1, %v1138_v23 }
  0x14   :  { %1146 = vmatprep.subr.msk.bf16.mxu1 %vm1254_vm1, %v1144_v31 }
  0x17   :  { %1101 = vmatpush3.bf16.xpose.msk.msra.mxu0 %vm1254_vm1, %v1099_v33 }
  0x18   :  { %1104 = vmatprep.subr.msk.bf16.mxu0 %vm1254_vm1, %v1102_v35 }
  0x19   :  { %15 = vsyncpa [#allocation4], 0  ;;  %v57_v41 = vld [vmem:[%s1560_s0 + $0xc0] sm:$0xff]  ;;  %v58_v42 = vld [vmem:[%s1560_s0 + $0xc8] sm:$0xff]  ;;  %v1105_v44 = vpack.c.bf16 %v40_v39, %v39_v38  ;;  %508 = vperm.xlu0 %1155, %v504_v40   ;;  %vm521_vm2 = vcmask 261120   ;;  %vm1192_vm3 = vmmov 0  }
  0x1a   :  { %v505_v43 = vld [vmem:[%s1564_s4 + $0x8] sm:$0xff]  ;;  %v1108_v45 = vpack.c.bf16 %v58_v42, %v57_v41  ;;  %v83_v46 = vld [vmem:[%s1562_s2 + $0x20] sm:$0xff]  ;;  %v59_v50 = vld [vmem:[%s1560_s0 + $0xd0] sm:$0xff] }
  0x1b   :  { %513 = vperm.xlu1 %1156, %v505_v43   ;;  %1149 = vmatpush3.bf16.xpose.msk.msra.mxu1 %vm1254_vm1, %v1144_v31  ;;  %v84_v47 = vld [vmem:[%s1562_s2 + $0x28] sm:$0xff]  ;;  %v41_v48 = vld [vmem:[%s1560_s0 + $0x40] sm:$0xff]  ;;  %v85_v51 = vld [vmem:[%s1562_s2 + $0x30] sm:$0xff] }
  0x1c   :  { %v42_v49 = vld [vmem:[%s1560_s0 + $0x48] sm:$0xff]  ;;  %v60_v52 = vld [vmem:[%s1560_s0 + $0xd8] sm:$0xff]  ;;  %v73_v55 = vld [vmem:[%s1561_s1 + $0x10] sm:$0xff] }
  0x1d   :  { %109 = vperm.xlu0 %1155, %v83_v46   ;;  %v72_v53 = vld [vmem:[%s1561_s1 + $0x8] sm:$0xff]  ;;  %v86_v54 = vld [vmem:[%s1562_s2 + $0x38] sm:$0xff]  ;;  %v1111_v56 = vpack.c.bf16 %v42_v49, %v41_v48  ;;  %v1114_v57 = vpack.c.bf16 %v60_v52, %v59_v50  ;;  %v759_v58 = vld [vmem:[#allocation2] sm:$0x1] }
  0x1e   :  { %v74_v59 = vld [vmem:[%s1561_s1 + $0x18] sm:$0xff]  ;;  %v75_v60 = vld [vmem:[%s1561_s1 + $0x20] sm:$0xff]  ;;  %v43_v61 = vld [vmem:[%s1560_s0 + $0x50] sm:$0xff] }
  0x1f   :  { %1107 = vmatpush3.bf16.xpose.msk.msra.mxu0 %vm1254_vm1, %v1105_v44  ;;  %114 = vperm.xlu1 %1156, %v84_v47   ;;  %v44_v62 = vld [vmem:[%s1560_s0 + $0x58] sm:$0xff]  ;;  %v61_v63 = vld [vmem:[%s1560_s0 + $0xe0] sm:$0xff]  ;;  %v62_v0 = vld [vmem:[%s1560_s0 + $0xe8] sm:$0xff] }
  0x20   :  { %1110 = vmatprep.subr.msk.bf16.mxu0 %vm1254_vm1, %v1108_v45  ;;  %v76_v1 = vld [vmem:[%s1561_s1 + $0x28] sm:$0xff]  ;;  %v77_v2 = vld [vmem:[%s1561_s1 + $0x30] sm:$0xff]  ;;  %v1117_v3 = vpack.c.bf16 %v44_v62, %v43_v61  ;;  %v1120_v4 = vpack.c.bf16 %v62_v0, %v61_v63  ;;  %v78_v6 = vld [vmem:[%s1561_s1 + $0x38] sm:$0xff] }
  0x21   :  { %119 = vperm.xlu0 %1155, %v85_v51   ;;  %v45_v7 = vld [vmem:[%s1560_s0 + $0x60] sm:$0xff]  ;;  %v46_v9 = vld [vmem:[%s1560_s0 + $0x68] sm:$0xff]  ;;  %v63_v10 = vld [vmem:[%s1560_s0 + $0xf0] sm:$0xff] }
  0x22   :  { %1051 = vmatmul.mubr.msk.f32.vlgmr.msra.gmra.mrb[0].mxu1 %vm127_vm0, %v72_v53  ;;  %v64_v11 = vld [vmem:[%s1560_s0 + $0xf8] sm:$0xff]  ;;  %v1123_v12 = vpack.c.bf16 %v46_v9, %v45_v7  ;;  %v47_v14 = vld [vmem:[%s1560_s0 + $0x70] sm:$0xff]  ;;  %v1191_v9 = vmov 0.0  }
  0x23   :  { %124 = vperm.xlu1 %1156, %v86_v54   ;;  %1053 = vmatprep.mubr.msk.f32.mxu1 %vm127_vm0, %v73_v55  ;;  %v1126_v13 = vpack.c.bf16 %v64_v11, %v63_v10  ;;  %v48_v15 = vld [vmem:[%s1560_s0 + $0x78] sm:$0xff] }
  0x24   :  { %v1129_v16 = vpack.c.bf16 %v48_v15, %v47_v14 }
  0x25   :  { %762 = vperm.xlu0 %1155, %v759_v58  }
  0x26   :  { %1054 = vmatmul.mubr.msk.f32.gmra.mrb[2].mxu1 %vm127_vm0, %v74_v59 }
  0x27   :  { %1113 = vmatpush3.bf16.xpose.msk.msra.mxu0 %vm1254_vm1, %v1111_v56  ;;  %1056 = vmatprep.mubr.msk.f32.mxu1 %vm127_vm0, %v75_v60 }
  0x28   :  { %1116 = vmatprep.subr.msk.bf16.mxu0 %vm1254_vm1, %v1114_v57 }
  0x2a   :  { %1057 = vmatmul.mubr.msk.f32.gmra.mrb[4].mxu1 %vm127_vm0, %v76_v1 }
  0x2b   :  { %1059 = vmatprep.mubr.msk.f32.mxu1 %vm127_vm0, %v77_v2 }
  0x2e   :  { %1060 = vmatmul.mubr.msk.f32.gmra.mrb[6].mxu1 %vm127_vm0, %v78_v6 }
  0x2f   :  { %1119 = vmatpush3.bf16.xpose.msk.msra.mxu0 %vm1254_vm1, %v1117_v3  ;;  %557 = vmatprep.mubr.bf16.mxu1 %v1190_v8 }
  0x30   :  { %1122 = vmatprep.subr.msk.bf16.mxu0 %vm1254_vm1, %v1120_v4 }
  0x37   :  { %1125 = vmatpush3.bf16.xpose.msk.msra.mxu0 %vm1254_vm1, %v1123_v12 }
  0x38   :  { %1128 = vmatprep.subr.msk.bf16.mxu0 %vm1254_vm1, %v1126_v13 }
  0x3f   :  { %1131 = vmatpush3.bf16.xpose.msk.msra.mxu0 %vm1254_vm1, %v1129_v16 }
  0x46   :  { %1000 = vmatmul.mubr.msk.f32.vlgmr.msra.gmra.mrb[0].mxu0 %vm127_vm0, %v1308_v24 }
  0x47   :  { %1001 = vmatprep.mubr.msk.f32.mxu0 %vm127_vm0, %v72_v53 }
  0x4a   :  { %1002 = vmatmul.mubr.msk.f32.gmra.mrb[2].mxu0 %vm127_vm0, %v72_v53 }
  0x4b   :  { %1003 = vmatprep.mubr.msk.f32.mxu0 %vm127_vm0, %v73_v55 }
  0x4e   :  { %1004 = vmatmul.mubr.msk.f32.gmra.mrb[4].mxu0 %vm127_vm0, %v73_v55 }
  0x4f   :  { %1005 = vmatprep.mubr.msk.f32.mxu0 %vm127_vm0, %v74_v59 }
  0x52   :  { %1006 = vmatmul.mubr.msk.f32.gmra.mrb[6].mxu0 %vm127_vm0, %v74_v59 }
  0x53   :  { %1007 = vmatprep.mubr.msk.f32.mxu0 %vm127_vm0, %v75_v60 }
  0x56   :  { %1008 = vmatmul.mubr.msk.f32.gmra.mrb[8].mxu0 %vm127_vm0, %v75_v60 }
  0x57   :  { %1009 = vmatprep.mubr.msk.f32.mxu0 %vm127_vm0, %v76_v1 }
  0x5a   :  { %1010 = vmatmul.mubr.msk.f32.gmra.mrb[10].mxu0 %vm127_vm0, %v76_v1 }
  0x5b   :  { %1011 = vmatprep.mubr.msk.f32.mxu0 %vm127_vm0, %v77_v2 }
  0x5e   :  { %1012 = vmatmul.mubr.msk.f32.gmra.mrb[12].mxu0 %vm127_vm0, %v77_v2 }
  0x5f   :  { %1013 = vmatprep.mubr.msk.f32.mxu0 %vm127_vm0, %v78_v6 }
  0x62   :  { %1014 = vmatmul.mubr.msk.f32.gmra.mrb[14].mxu0 %vm127_vm0, %v78_v6  ;;  %v1157_v6 = vld [vmem:[%s1563_s3] sm:$0xff]  }
  0x8a   :  { %v100_v17 = vpop.permute.xlu1 %99 }
  0x8b   :  { %v90_v5 = vpop.permute.xlu0 %89 }
  0x8e   :  { %v105_v26 = vpop.permute.xlu1 %104 }
  0x8f   :  { %v95_v18 = vpop.permute.xlu0 %94 }
  0x98   :  { %v509_v14 = vpop.permute.xlu0 %508 }
  0xf5   :  { %v1052_v19 = vpop.f32.mrb[0].mxu1 }
  0xf6   :  { %v451_v20 = vadd.f32 %v1052_v19, %v95_v18  ;;  %v445_v21 = vpop.f32.mrb[1].mxu1 }
  0xf7   :  { %v446_v22 = vadd.f32 %v445_v21, %v90_v5 }
  0xf8   :  { %v489_v23 = vmax.f32 %v451_v20, 0.0 }
  0xf9   :  { %v486_v24 = vmax.f32 %v446_v22, 0.0  ;;  %v1055_v25 = vpop.f32.mrb[2].mxu1 }
  0xfa   :  { %v461_v27 = vadd.f32 %v1055_v25, %v105_v26  ;;  %v455_v28 = vpop.f32.mrb[3].mxu1 }
  0xfb   :  { %v500_v29 = vpack.c.bf16 %v489_v23, %v486_v24  ;;  %v456_v30 = vadd.f32 %v455_v28, %v100_v17 }
  0xfc   :  { %v495_v31 = vmax.f32 %v461_v27, 0.0 }
  0xfd   :  { %v492_v32 = vmax.f32 %v456_v30, 0.0  ;;  %v1493_v33 = vpop.f32.mrb[4].mxu1 }
  0xfe   :  { %v1495_v34 = vpop.f32.mrb[5].mxu1 }
  0xff   :  { %v503_v35 = vpack.c.bf16 %v495_v31, %v492_v32 }
 0x101   :  { %v1497_v36 = vpop.f32.mrb[6].mxu1 }
 0x102   :  { %v1499_v37 = vpop.f32.mrb[7].mxu1 }
 0x119   :  { %v332_v38 = vpop.f32.mrb[0].mxu0 }
 0x11a   :  { %v334_v39 = vpop.f32.mrb[1].mxu0  ;;  %v333_v40 = vadd.f32 %v332_v38, %v90_v5 }
 0x11b   :  { %v335_v41 = vadd.f32 %v334_v39, %v90_v5 }
 0x11c   :  { %v484_v46 = vmax.f32 %v333_v40, 0.0 }
 0x11d   :  { %v338_v42 = vpop.f32.mrb[2].mxu0  ;;  %v485_v48 = vmax.f32 %v335_v41, 0.0 }
 0x11e   :  { %v339_v43 = vadd.f32 %v338_v42, %v95_v18  ;;  %v340_v44 = vpop.f32.mrb[3].mxu0 }
 0x11f   :  { %v341_v45 = vadd.f32 %v340_v44, %v95_v18  ;;  %v110_v44 = vpop.permute.xlu0 %109 }
 0x120   :  { %v487_v47 = vmax.f32 %v339_v43, 0.0  ;;  %v1159_v43 = vld [vmem:[%s1565_s5 + $0x8] sm:$0xff]  }
 0x121   :  { %v488_v49 = vmax.f32 %v341_v45, 0.0  ;;  %v344_v50 = vpop.f32.mrb[4].mxu0 }
 0x122   :  { %v498_v51 = vpack.c.bf16 %v487_v47, %v484_v46  ;;  %v346_v52 = vpop.f32.mrb[5].mxu0  ;;  %v345_v54 = vadd.f32 %v344_v50, %v100_v17 }
 0x123   :  { %v499_v53 = vpack.c.bf16 %v488_v49, %v485_v48  ;;  %v347_v55 = vadd.f32 %v346_v52, %v100_v17  ;;  %v514_v17 = vpop.permute.xlu1 %513 }
 0x124   :  { %v490_v60 = vmax.f32 %v345_v54, 0.0 }
 0x125   :  { %v350_v56 = vpop.f32.mrb[6].mxu0  ;;  %525 = vmatprep.subr.bf16.mxu1 %v499_v53  ;;  %v491_v62 = vmax.f32 %v347_v55, 0.0 }
 0x126   :  { %v351_v57 = vadd.f32 %v350_v56, %v105_v26  ;;  %v352_v58 = vpop.f32.mrb[7].mxu0  ;;  %526 = vmatpush1.bf16.msra.mxu1 %v498_v51 }
 0x127   :  { %v353_v59 = vadd.f32 %v352_v58, %v105_v26  ;;  %v115_v46 = vpop.permute.xlu1 %114 }
 0x128   :  { %v493_v61 = vmax.f32 %v351_v57, 0.0 }
 0x129   :  { %v494_v63 = vmax.f32 %v353_v59, 0.0  ;;  %v356_v0 = vpop.f32.mrb[8].mxu0 }
 0x12a   :  { %v501_v1 = vpack.c.bf16 %v493_v61, %v490_v60  ;;  %v358_v2 = vpop.f32.mrb[9].mxu0  ;;  %v357_v45 = vadd.f32 %v356_v0, %v110_v44  ;;  %v120_v60 = vpop.permute.xlu0 %119 }
 0x12b   :  { %v502_v3 = vpack.c.bf16 %v494_v63, %v491_v62  ;;  %v359_v47 = vadd.f32 %v358_v2, %v110_v44  ;;  %v125_v0 = vpop.permute.xlu1 %124 }
 0x12d   :  { %v362_v4 = vpop.f32.mrb[10].mxu0  ;;  %527 = vmatprep.subr.bf16.mxu1 %v502_v3 }
 0x12e   :  { %v364_v7 = vpop.f32.mrb[11].mxu0  ;;  %528 = vmatpush1.bf16.msra.mxu1 %v501_v1  ;;  %v363_v49 = vadd.f32 %v362_v4, %v115_v46 }
 0x12f   :  { %1062 = vmatprep.subr.bf16.mxu1 %v1191_v9  ;;  %v365_v52 = vadd.f32 %v364_v7, %v115_v46 }
 0x131   :  { %v1505_v10 = vpop.f32.mrb[12].mxu0  ;;  %957 = vmatmul.mubr.msk.bf16.vlgmr.msra.gmra.mrb[8].mxu1 %vm521_vm2, %v1157_v6 }
 0x132   :  { %v1508_v11 = vpop.f32.mrb[13].mxu0  ;;  %1063 = vmatpush3.bf16.msra.mxu1 %v500_v29  ;;  %1066 = vmatprep.mubr.msk.bf16.mxu1 %vm1192_vm3, %v1191_v9 }
 0x133   :  { %1064 = vmatprep.subr.bf16.mxu1 %v1191_v9  ;;  %v371_v1 = vadd.f32 %v1508_v11, %v120_v60  ;;  %v476_v11 = vadd.f32 %v1499_v37, %v120_v60  ;;  %v752_v37 = vld [vmem:[%s1566_s6] sm:$0x1]  ;;  %s1194_s6 = smov [#allocation3]  }
 0x134   :  { %s894_s26 = sshll.u32 %s1194_s6, 4  ;;  %s895_s26 = int_to_ptr.vmem [resolvable:$true] %s894_s26 }
 0x135   :  { %v1513_v12 = vpop.f32.mrb[14].mxu0  ;;  %s1166_s4 = scalar_lea.vmem %s895_s26, 48  ;;  %s1170_s27 = scalar_lea.vmem %s895_s26, 64 }
 0x136   :  { %v1515_v13 = vpop.f32.mrb[15].mxu0  ;;  %1065 = vmatpush3.bf16.msra.mxu1 %v503_v35  ;;  %v1158_v35 = vld [vmem:[%s1565_s5] sm:$0xff]   ;;  %v375_v4 = vadd.f32 %v1513_v12, %v125_v0  ;;  %v466_v12 = vadd.f32 %v1495_v34, %v110_v44  ;;  %p1167_p0 = scmp.ne.s32.totalorder %s895_s26, %s1166_s4  ;;  %p1171_p1 = scmp.lt.s32.totalorder %s895_s26, %s895_s26 }
 0x137   :  { %p1172_p2 = scmp.lt.s32.totalorder %s1170_s27, %s1166_s4 }
 0x139   :  { %1067 = vmatmul.mubr.msk.bf16.vlgmr.msra.gmra.mrb[12].mxu1 %vm521_vm2, %v1157_v6  ;;  %p1173_p3 = por %p1172_p2, %p1171_p1 }
 0x13a   :  { %670 = vmatprep.mubr.bf16.mxu1 %v1190_v8 }
 0x13b   :  { %p1174_p4 = pnand %p1173_p3, %p1167_p0 }
 0x204   :  { %v559_v15 = vpop.f32.mrb[8].mxu1 }
 0x205   :  { %v560_v16 = vadd.f32 %v559_v15, %v509_v14  ;;  %v561_v5 = vpop.f32.mrb[9].mxu1 }
 0x206   :  { %v562_v18 = vadd.f32 %v561_v5, %v509_v14  ;;  %v563_v19 = vpop.f32.mrb[10].mxu1 }
 0x207   :  { %v564_v20 = vadd.f32 %v563_v19, %v514_v17  ;;  %v565_v21 = vpop.f32.mrb[11].mxu1  ;;  %v609_v23 = vmax.f32 %v560_v16, 0.0 }
 0x208   :  { %v566_v22 = vadd.f32 %v565_v21, %v514_v17  ;;  %v610_v25 = vmax.f32 %v562_v18, 0.0 }
 0x209   :  { %v612_v24 = vmax.f32 %v564_v20, 0.0 }
 0x20a   :  { %v613_v26 = vmax.f32 %v566_v22, 0.0 }
 0x20b   :  { %v619_v27 = vpack.c.bf16 %v612_v24, %v609_v23 }
 0x20c   :  { %v620_v28 = vpack.c.bf16 %v613_v26, %v610_v25  ;;  %v602_v29 = vpop.f32.mrb[12].mxu1 }
 0x20d   :  { %v603_v30 = vadd.f32 %v602_v29, %v509_v14  ;;  %v1068_v31 = vpop.f32.mrb[13].mxu1  ;;  %v377_v14 = vadd.f32 %v1515_v13, %v125_v0  ;;  %v481_v13 = vadd.f32 %v1497_v36, %v125_v0  ;;  %v471_v29 = vadd.f32 %v1493_v33, %v115_v46 }
 0x20e   :  { %v605_v32 = vpop.f32.mrb[14].mxu1  ;;  %638 = vmatprep.subr.bf16.mxu1 %v620_v28 }
 0x20f   :  { %v606_v38 = vadd.f32 %v605_v32, %v514_v17  ;;  %v1069_v39 = vpop.f32.mrb[15].mxu1  ;;  %639 = vmatpush1.bf16.msra.mxu1 %v619_v27  ;;  %v611_v40 = vmax.f32 %v603_v30, 0.0 }
 0x211   :  { %v614_v41 = vmax.f32 %v606_v38, 0.0 }
 0x212   :  { %961 = vmatmul.mubr.msk.bf16.vlgmr.msra.gmra.mrb[16].mxu1 %vm127_vm0, %v1158_v35 }
 0x213   :  { %v621_v42 = vpack.c.bf16 %v614_v41, %v611_v40  ;;  %680 = vmatprep.mubr.bf16.mxu1 %v1190_v8  ;;  %v765_v40 = vlaneseq }
 0x215   :  { %1070 = vmatprep.subr.bf16.mxu1 %v621_v42  ;;  %v766_v41 = vshrl.u32 %v765_v40, 7  ;;  %vm885_vm4 = vcmp.lt.s32.totalorder %v765_v40, 300 }
 0x216   :  { %1071 = vmatpush3.bf16.msra.mxu1 %v621_v42 }
 0x217   :  { %v767_v42 = vsub.s32 0, %v766_v41 }
 0x21a   :  { %962 = vmatmul.mubr.msk.bf16.gmra.mrb[20].mxu1 %vm127_vm0, %v1159_v43 }
 0x21b   :  { %1072 = vmatprep.mubr.msk.bf16.mxu1 %vm127_vm0, %v1158_v35 }
 0x222   :  { %1073 = vmatmul.mubr.msk.bf16.vlgmr.msra.gmra.mrb[24].mxu1 %vm127_vm0, %v1159_v43  ;;  %v763_v43 = vpop.permute.xlu0 %762 }
 0x223   :  { %804 = vmatprep.mubr.bf16.mxu1 %v1190_v8  ;;  %v369_v8 = vadd.f32 %v1505_v10, %v120_v60  ;;  %v768_v44 = vrot.slane %v763_v43, %v767_v42 }
 0x2e5   :  { %v672_v48 = vpop.f32.mrb[16].mxu1 }
 0x2e6   :  { %v673_v50 = vadd.f32 %v672_v48, %v357_v45  ;;  %v674_v51 = vpop.f32.mrb[17].mxu1 }
 0x2e7   :  { %v675_v53 = vadd.f32 %v674_v51, %v359_v47  ;;  %v676_v54 = vpop.f32.mrb[18].mxu1 }
 0x2e8   :  { %v677_v55 = vadd.f32 %v676_v54, %v363_v49  ;;  %v678_v56 = vpop.f32.mrb[19].mxu1  ;;  %v740_v58 = vmax.f32 %v673_v50, 0.0  ;;  %v1193_v54 = vmov 1966171168  }
 0x2e9   :  { %v679_v57 = vadd.f32 %v678_v56, %v365_v52  ;;  %v741_v61 = vmax.f32 %v675_v53, 0.0 }
 0x2ea   :  { %v743_v59 = vmax.f32 %v677_v55, 0.0  ;;  %v861_v55 = vunpack.c.l.s4 %v1193_v54 }
 0x2eb   :  { %v744_v62 = vmax.f32 %v679_v57, 0.0 }
 0x2ec   :  { %v753_v63 = vpack.c.bf16 %v743_v59, %v740_v58  ;;  %v862_v60 = vunpack.c.0.s8 %v861_v55 }
 0x2ed   :  { %v754_v2 = vpack.c.bf16 %v744_v62, %v741_v61  ;;  %v682_v3 = vpop.f32.mrb[20].mxu1 }
 0x2ee   :  { %v683_v6 = vadd.f32 %v682_v3, %v369_v8  ;;  %v684_v7 = vpop.f32.mrb[21].mxu1  ;;  %v865_v61 = vsub.s32 %v862_v60, %v766_v41 }
 0x2ef   :  { %v685_v15 = vadd.f32 %v684_v7, %v371_v1  ;;  %v686_v16 = vpop.f32.mrb[22].mxu1  ;;  %772 = vmatprep.subr.bf16.mxu1 %v754_v2 }
 0x2f0   :  { %v687_v5 = vadd.f32 %v686_v16, %v375_v4  ;;  %v688_v17 = vpop.f32.mrb[23].mxu1  ;;  %773 = vmatpush1.bf16.msra.mxu1 %v753_v63  ;;  %v746_v10 = vmax.f32 %v683_v6, 0.0 }
 0x2f1   :  { %v689_v18 = vadd.f32 %v688_v17, %v377_v14  ;;  %v747_v20 = vmax.f32 %v685_v15, 0.0 }
 0x2f2   :  { %v749_v19 = vmax.f32 %v687_v5, 0.0 }
 0x2f3   :  { %v750_v21 = vmax.f32 %v689_v18, 0.0 }
 0x2f4   :  { %v756_v22 = vpack.c.bf16 %v749_v19, %v746_v10 }
 0x2f5   :  { %v757_v23 = vpack.c.bf16 %v750_v21, %v747_v20  ;;  %v1074_v24 = vpop.f32.mrb[24].mxu1 }
 0x2f6   :  { %v734_v25 = vadd.f32 %v1074_v24, %v476_v11  ;;  %v725_v26 = vpop.f32.mrb[25].mxu1 }
 0x2f7   :  { %v726_v27 = vadd.f32 %v725_v26, %v466_v12  ;;  %v1075_v28 = vpop.f32.mrb[26].mxu1  ;;  %774 = vmatprep.subr.bf16.mxu1 %v757_v23 }
 0x2f8   :  { %v737_v30 = vadd.f32 %v1075_v28, %v481_v13  ;;  %v728_v31 = vpop.f32.mrb[27].mxu1  ;;  %775 = vmatpush1.bf16.msra.mxu1 %v756_v22  ;;  %v748_v34 = vmax.f32 %v734_v25, 0.0 }
 0x2f9   :  { %v729_v32 = vadd.f32 %v728_v31, %v471_v29  ;;  %1076 = vmatprep.subr.bf16.mxu1 %v1191_v9  ;;  %v742_v36 = vmax.f32 %v726_v27, 0.0 }
 0x2fa   :  { %v751_v35 = vmax.f32 %v737_v30, 0.0 }
 0x2fb   :  { %v745_v38 = vmax.f32 %v729_v32, 0.0  ;;  %965 = vmatmul.mubr.msk.bf16.vlgmr.msra.gmra.mrb[28].mxu1 %vm521_vm2, %v752_v37 }
 0x2fc   :  { %v758_v39 = vpack.c.bf16 %v751_v35, %v748_v34  ;;  %1080 = vmatprep.mubr.msk.bf16.mxu1 %vm1192_vm3, %v1191_v9 }
 0x2fd   :  { %v755_v33 = vpack.c.bf16 %v745_v38, %v742_v36 }
 0x2ff   :  { %1077 = vmatpush3.bf16.msra.mxu1 %v755_v33 }
 0x300   :  { %1078 = vmatprep.subr.bf16.mxu1 %v1191_v9 }
 0x303   :  { %1079 = vmatpush3.bf16.msra.mxu1 %v758_v39 }
 0x306   :  { %1081 = vmatmul.mubr.msk.bf16.vlgmr.msra.gmra.mrb[32].mxu1 %vm521_vm2, %v752_v37 }
 0x3ce   :  { %v806_v45 = vpop.f32.mrb[28].mxu1 }
 0x3cf   :  { %v807_v46 = vadd.f32 %v806_v45, %v768_v44  ;;  %v808_v47 = vpop.f32.mrb[29].mxu1 }
 0x3d0   :  { %v809_v48 = vadd.f32 %v808_v47, %v768_v44  ;;  %v810_v49 = vpop.f32.mrb[30].mxu1 }
 0x3d1   :  { %1160 = vtanh.f32 %v807_v46  ;;  %v811_v50 = vpop.f32.mrb[31].mxu1 }
 0x3d2   :  { %1162 = vtanh.f32 %v809_v48 }
 0x3d9   :  { %v847_v51 = vpop.f32.mrb[32].mxu1 }
 0x3da   :  { %v848_v52 = vadd.f32 %v847_v51, %v768_v44  ;;  %v1082_v53 = vpop.f32.mrb[33].mxu1 }
 0x3db   :  { %v1161_v9 = vpop.eup %1160  ;;  %v850_v56 = vpop.f32.mrb[34].mxu1 }
 0x3dc   :  { %v1163_v57 = vpop.eup %1162  ;;  %1164 = vtanh.f32 %v848_v52  ;;  %v1083_v58 = vpop.f32.mrb[35].mxu1 }
 0x3dd   :  { %v859_v59 = vcombine.low %v1161_v9, %v1163_v57 }
 0x3df   :  { %v866_v8 = vrot.slane %v859_v59, %v865_v61 }
 0x3e6   :  { %v1165_v62 = vpop.eup %1164 }
 0x3e7   :  { %v873_v63 = vrot.slane %v1165_v62, %v865_v61 }
 0x3e9   :  { %v874_v0 = vcombine.low %v866_v8, %v873_v63 }
 0x3eb   :  { %v881_v1 = vrot.slane %v874_v0, %v865_v61 }
 0x3ed   :  { %887 = vst.msk [vmem:[#allocation3] sm:$0x7] %vm885_vm4, %v881_v1 }
 0x3ee   :  { %1177 = shalt.err (!%p1174_p4)
}
 0x3ef   :  { %s1178_s30 = scalar_lea.hbm %s1568_s8, 48 }
 0x3f0   :  { %p1179_p5 = scmp.ne.s32.totalorder %s1568_s8, %s1178_s30  ;;  %p1182_p6 = scmp.lt.u32.totalorder %s1178_s30, %s1568_s8 }
 0x3f2   :  { %p1184_p7 = pnand %p1182_p6, %p1179_p5 }
 0x3f4   :  { %1187 = shalt.err (!%p1184_p7)
}
 0x3f5   :  { %897 = dma.vmem_to_hbm [thread:$0]  %s895_s26, 48, %s1568_s8, [#allocation4]  }
 0x3f6   :  { %1188 = dma.done.wait [#allocation4], 48  }
 0x3f7   :  { %1189 = vsyncadd [#allocation4], 4294967248 }
 0x3f8   :  { %901 = vsyncpa [#allocation4], 1 }

</bundles_post_ra>
